<compile_context>
chip_gen: v5e
topology: v5e:2x2
jax: 0.10.0
libtpu: 0.0.40
codegen_flags: <defaults>
</compile_context>

<pallas_src>
import functools

import jax
import jax.numpy as jnp
from jax.experimental import pallas as pl
from jax.experimental.pallas import tpu as pltpu


def _round_up(v, m):
    return ((v + m - 1) // m) * m


def _biaffine_kernel(x_ref, y_ref, wf_ref, r_ref, o_ref, *, n_out):
    # x_ref : [TB, Dxp]            (batch tile on sublanes, hidden on lanes)
    # y_ref : [TB, Dyp]            (un-replicated y block)
    # wf_ref: [Dxp, n_out*Dyp]     (resident across the batch grid)
    # r_ref : [n_out*Dyp, Npad]    (0/1 block reduction matrix, resident)
    # o_ref : [TB, Npad]           (lane-dense output block)
    z = jnp.dot(x_ref[...], wf_ref[...], preferred_element_type=jnp.float32)
    yb = y_ref[...]
    # y_tiled[b, o*Dyp + j] = yb[b, j]  — built in VMEM, never touches HBM.
    yt = yb if n_out == 1 else jnp.concatenate([yb] * n_out, axis=-1)
    p = z * yt                                            # VPU, hides under MXU
    o_ref[...] = jnp.dot(p, r_ref[...],
                         preferred_element_type=jnp.float32).astype(o_ref.dtype)


@functools.partial(jax.jit, static_argnames=("bias_x", "bias_y"))
def biaffine_classifier(x, y, weight, *, bias_x=True, bias_y=True):
    """x, y: [B, n_in] float32.  weight: [n_out, n_in+bias_x, n_in+bias_y]."""
    B, n_in = x.shape
    n_out, Dx, Dy = weight.shape
    assert Dx == n_in + int(bias_x) and Dy == n_in + int(bias_y)

    f32 = jnp.float32
    Dxp = _round_up(Dx, 128)
    Dyp = _round_up(Dy, 128)
    Npad = _round_up(n_out, 128)
    TB = min(256, _round_up(B, 8))        # batch tile (f32 sublane multiple)
    Bp = _round_up(B, TB)

    # --- wrapper-side bias concat + zero padding (jit-fused, free-ish) -------
    xb = x.astype(f32)
    yb = y.astype(f32)
    if bias_x:
        xb = jnp.concatenate([xb, jnp.ones((B, 1), f32)], axis=-1)
    if bias_y:
        yb = jnp.concatenate([yb, jnp.ones((B, 1), f32)], axis=-1)
    xb = jnp.pad(xb, ((0, Bp - B), (0, Dxp - Dx)))
    yb = jnp.pad(yb, ((0, Bp - B), (0, Dyp - Dy)))

    # W_flat[i, o*Dyp + j] = W[o, i, j]   (zero-padded)
    w_pad = jnp.pad(weight.astype(f32), ((0, 0), (0, Dxp - Dx), (0, Dyp - Dy)))
    w_flat = jnp.transpose(w_pad, (1, 0, 2)).reshape(Dxp, n_out * Dyp)

    # Block reduction matrix: R[o*Dyp + j, o] = 1  (extra Npad columns are 0)
    r = (jnp.arange(n_out * Dyp)[:, None] // Dyp
         == jnp.arange(Npad)[None, :]).astype(f32)        # [n_out*Dyp, Npad]

    grid = (Bp // TB,)

    flops = 2 * Bp * Dxp * (n_out * Dyp) + 2 * Bp * (n_out * Dyp) * Npad
    bytes_accessed = 4 * (Bp * Dxp + Bp * Dyp
                          + Dxp * n_out * Dyp + n_out * Dyp * Npad + Bp * Npad)

    kernel = functools.partial(_biaffine_kernel, n_out=n_out)

    out_padded = pl.pallas_call(
        kernel,
        out_shape=jax.ShapeDtypeStruct((Bp, Npad), f32),
        grid=grid,
        in_specs=[
            pl.BlockSpec((TB, Dxp), lambda i: (i, 0)),
            pl.BlockSpec((TB, Dyp), lambda i: (i, 0)),
            pl.BlockSpec((Dxp, n_out * Dyp), lambda i: (0, 0)),   # resident
            pl.BlockSpec((n_out * Dyp, Npad), lambda i: (0, 0)),  # resident
        ],
        out_specs=pl.BlockSpec((TB, Npad), lambda i: (i, 0)),
        compiler_params=pltpu.CompilerParams(
            dimension_semantics=("parallel",),
        ),
        cost_estimate=pl.CostEstimate(
            flops=int(flops), transcendentals=0,
            bytes_accessed=int(bytes_accessed)),
    )(xb, yb, w_flat, r)

    return out_padded[:B, :n_out]


def _xavier_normal(key, shape):
    # PyTorch nn.init.xavier_normal_ for a 3-D tensor (n_out, Dx, Dy):
    #   receptive_field = Dy, fan_in = Dx * Dy, fan_out = n_out * Dy
    n_out, Dx, Dy = shape
    fan_in = Dx * Dy
    fan_out = n_out * Dy
    std = (2.0 / (fan_in + fan_out)) ** 0.5
    return std * jax.random.normal(key, shape, dtype=jnp.float32)


if __name__ == "__main__":
    # Small shapes consistent with the 2-D forward: x, y are [batch, hidden].
    B, n_in, n_out = 8, 32, 2
    bias_x = bias_y = True
    D = n_in + 1

    key = jax.random.PRNGKey(0)
    kx, ky, kw = jax.random.split(key, 3)
    x = jax.random.normal(kx, (B, n_in), dtype=jnp.float32)
    y = jax.random.normal(ky, (B, n_in), dtype=jnp.float32)
    weight = _xavier_normal(kw, (n_out, D, D))   # deterministic synthetic init

    out = biaffine_classifier(x, y, weight, bias_x=bias_x, bias_y=bias_y)
    out = jax.block_until_ready(out)

    # Pure-JAX reference (torch.einsum('bi,oij,bj->bo', xb, W, yb))
    xb = jnp.concatenate([x, jnp.ones((B, 1), jnp.float32)], axis=-1)
    yb = jnp.concatenate([y, jnp.ones((B, 1), jnp.float32)], axis=-1)
    ref = jnp.einsum("bi,oij,bj->bo", xb, weight, yb)
    assert out.shape == (B, n_out)
    assert jnp.allclose(out, ref, atol=1e-4, rtol=1e-4), "mismatch vs reference"

    print("KERNEL_OK")
</pallas_src>

<mosaic_0001>
module attributes {stable_mosaic.version = 11 : i64} {
  func.func @_biaffine_kernel(%arg0: i32, %arg1: memref<8x128xf32, #tpu.memory_space<vmem>>, %arg2: memref<8x128xf32, #tpu.memory_space<vmem>>, %arg3: memref<128x256xf32, #tpu.memory_space<vmem>>, %arg4: memref<256x128xf32, #tpu.memory_space<vmem>>, %arg5: memref<8x128xf32, #tpu.memory_space<vmem>>) attributes {dimension_semantics = [#tpu.dimension_semantics<parallel>], iteration_bounds = array<i64: 1>, scalar_prefetch = 0 : i64, scratch_operands = 0 : i64, tpu.core_type = #tpu.core_type<tc>, window_params = [{transform_indices = @transform_0, window_bounds = array<i64: 8, 128>}, {transform_indices = @transform_1, window_bounds = array<i64: 8, 128>}, {pipeline_mode = #tpu.pipeline_mode<synchronous>, transform_indices = @transform_2, window_bounds = array<i64: 128, 256>}, {pipeline_mode = #tpu.pipeline_mode<synchronous>, transform_indices = @transform_3, window_bounds = array<i64: 256, 128>}, {transform_indices = @transform_4, window_bounds = array<i64: 8, 128>}]} {
    %c0 = arith.constant 0 : index
    %c0_0 = arith.constant 0 : index
    %0 = vector.load %arg1[%c0, %c0_0] : memref<8x128xf32, #tpu.memory_space<vmem>>, vector<8x128xf32>
    %c0_1 = arith.constant 0 : index
    %c0_2 = arith.constant 0 : index
    %1 = vector.load %arg3[%c0_1, %c0_2] : memref<128x256xf32, #tpu.memory_space<vmem>>, vector<128x256xf32>
    %cst = arith.constant dense<0.000000e+00> : vector<8x256xf32>
    %2 = tpu.matmul %0, %1, %cst {dimension_numbers = #tpu.dot_dimension_numbers<[1], [0], [0], [1], [0, 0, 1, 1], [], []>} : vector<8x128xf32>, vector<128x256xf32>, vector<8x256xf32> -> vector<8x256xf32>
    %c0_3 = arith.constant 0 : index
    %c0_4 = arith.constant 0 : index
    %3 = vector.load %arg2[%c0_3, %c0_4] : memref<8x128xf32, #tpu.memory_space<vmem>>, vector<8x128xf32>
    %4 = tpu.concatenate %3, %3 in 1 : vector<8x128xf32>, vector<8x128xf32> -> vector<8x256xf32>
    %5 = arith.mulf %2, %4 : vector<8x256xf32>
    %c0_5 = arith.constant 0 : index
    %c0_6 = arith.constant 0 : index
    %6 = vector.load %arg4[%c0_5, %c0_6] : memref<256x128xf32, #tpu.memory_space<vmem>>, vector<256x128xf32>
    %cst_7 = arith.constant dense<0.000000e+00> : vector<8x128xf32>
    %7 = tpu.matmul %5, %6, %cst_7 {dimension_numbers = #tpu.dot_dimension_numbers<[1], [0], [0], [1], [0, 0, 1, 1], [], []>} : vector<8x256xf32>, vector<256x128xf32>, vector<8x128xf32> -> vector<8x128xf32>
    %c0_8 = arith.constant 0 : index
    %c0_9 = arith.constant 0 : index
    %8 = vector.load %arg5[%c0_8, %c0_9] : memref<8x128xf32, #tpu.memory_space<vmem>>, vector<8x128xf32>
    tpu.vector_store %arg5[%c0_8, %c0_9], %7 {strides = array<i32>} : memref<8x128xf32, #tpu.memory_space<vmem>>, vector<8x128xf32>,
    return
  }
  func.func @transform_0(%arg0: i32) -> (i32, i32) {
    %c0_i32 = arith.constant 0 : i32
    %c0_i32_0 = arith.constant 0 : i32
    return %arg0, %c0_i32 : i32, i32
  }
  func.func @transform_1(%arg0: i32) -> (i32, i32) {
    %c0_i32 = arith.constant 0 : i32
    %c0_i32_0 = arith.constant 0 : i32
    return %arg0, %c0_i32 : i32, i32
  }
  func.func @transform_2(%arg0: i32) -> (i32, i32) {
    %c0_i32 = arith.constant 0 : i32
    %c0_i32_0 = arith.constant 0 : i32
    %c0_i32_1 = arith.constant 0 : i32
    return %c0_i32, %c0_i32_0 : i32, i32
  }
  func.func @transform_3(%arg0: i32) -> (i32, i32) {
    %c0_i32 = arith.constant 0 : i32
    %c0_i32_0 = arith.constant 0 : i32
    %c0_i32_1 = arith.constant 0 : i32
    return %c0_i32, %c0_i32_0 : i32, i32
  }
  func.func @transform_4(%arg0: i32) -> (i32, i32) {
    %c0_i32 = arith.constant 0 : i32
    %c0_i32_0 = arith.constant 0 : i32
    return %arg0, %c0_i32 : i32, i32
  }
}

</mosaic_0001>

<bundles_post_ra>
// kernel: biaffine_classifier.1
= control target key start
LH: loop header
LB: loop body
LE: loop exit
PB: predicated region body
PF: predicated region fallthrough
CT: control target
= control target key end

     0   :  { %s396_s2 = inlined_call_operand.vmem [shape: f32[128,256], index: 2, kind: input, shape index: {}]   ;;  %s397_s3 = inlined_call_operand.vmem [shape: f32[256,128], index: 3, kind: input, shape index: {}]   ;;  %s398_s0 = inlined_call_operand.vmem [shape: f32[8,128], index: 0, kind: input, shape index: {}]   ;;  %s399_s1 = inlined_call_operand.vmem [shape: f32[8,128], index: 1, kind: input, shape index: {}]   ;;  %s400_s4 = inlined_call_operand.vmem [shape: f32[8,128], index: 4, kind: output, shape index: {}]  }
   0x1   :  { %v48_v0 = vld [vmem:[%s396_s2 + $0xf0] sm:$0xff]  ;;  %v49_v1 = vld [vmem:[%s396_s2 + $0xf8] sm:$0xff]  ;;  %v46_v2 = vld [vmem:[%s396_s2 + $0xe0] sm:$0xff] }
   0x2   :  { %50 = vmatpush.msra.mxu0 %v48_v0  ;;  %70 = vmatpush.msra.mxu1 %v49_v1  ;;  %v47_v3 = vld [vmem:[%s396_s2 + $0xe8] sm:$0xff]  ;;  %v44_v4 = vld [vmem:[%s396_s2 + $0xd0] sm:$0xff]  ;;  %v45_v5 = vld [vmem:[%s396_s2 + $0xd8] sm:$0xff] }
   0x3   :  { %v42_v6 = vld [vmem:[%s396_s2 + $0xc0] sm:$0xff]  ;;  %v43_v7 = vld [vmem:[%s396_s2 + $0xc8] sm:$0xff]  ;;  %v40_v8 = vld [vmem:[%s396_s2 + $0xb0] sm:$0xff] }
   0x4   :  { %51 = vmatpush.msra.mxu0 %v46_v2  ;;  %71 = vmatpush.msra.mxu1 %v47_v3  ;;  %v41_v9 = vld [vmem:[%s396_s2 + $0xb8] sm:$0xff]  ;;  %v38_v10 = vld [vmem:[%s396_s2 + $0xa0] sm:$0xff]  ;;  %v39_v11 = vld [vmem:[%s396_s2 + $0xa8] sm:$0xff] }
   0x5   :  { %v36_v12 = vld [vmem:[%s396_s2 + $0x90] sm:$0xff]  ;;  %v37_v13 = vld [vmem:[%s396_s2 + $0x98] sm:$0xff]  ;;  %v34_v17 = vld [vmem:[%s396_s2 + $0x80] sm:$0xff] }
   0x6   :  { %52 = vmatpush.msra.mxu0 %v44_v4  ;;  %72 = vmatpush.msra.mxu1 %v45_v5  ;;  %v108_v14 = vld [vmem:[%s397_s3 + $0x78] sm:$0xff]  ;;  %v107_v16 = vld [vmem:[%s397_s3 + $0x70] sm:$0xff]  ;;  %v35_v18 = vld [vmem:[%s396_s2 + $0x88] sm:$0xff] }
   0x7   :  { %v124_v15 = vld [vmem:[%s397_s3 + $0xf8] sm:$0xff]  ;;  %125 = vmatpush.msra.mxu2 %v108_v14  ;;  %v123_v19 = vld [vmem:[%s397_s3 + $0xf0] sm:$0xff]  ;;  %v106_v20 = vld [vmem:[%s397_s3 + $0x68] sm:$0xff] }
   0x8   :  { %53 = vmatpush.msra.mxu0 %v42_v6  ;;  %73 = vmatpush.msra.mxu1 %v43_v7  ;;  %v122_v21 = vld [vmem:[%s397_s3 + $0xe8] sm:$0xff]  ;;  %v32_v22 = vld [vmem:[%s396_s2 + $0x70] sm:$0xff]  ;;  %v33_v23 = vld [vmem:[%s396_s2 + $0x78] sm:$0xff] }
   0x9   :  { %145 = vmatpush.msra.mxu3 %v124_v15  ;;  %126 = vmatpush.msra.mxu2 %v107_v16  ;;  %v105_v24 = vld [vmem:[%s397_s3 + $0x60] sm:$0xff]  ;;  %v31_v27 = vld [vmem:[%s396_s2 + $0x68] sm:$0xff]  ;;  %v104_v28 = vld [vmem:[%s397_s3 + $0x58] sm:$0xff] }
   0xa   :  { %54 = vmatpush.msra.mxu0 %v40_v8  ;;  %74 = vmatpush.msra.mxu1 %v41_v9  ;;  %v121_v25 = vld [vmem:[%s397_s3 + $0xe0] sm:$0xff]  ;;  %v120_v29 = vld [vmem:[%s397_s3 + $0xd8] sm:$0xff]  ;;  %v28_v30 = vld [vmem:[%s396_s2 + $0x50] sm:$0xff] }
   0xb   :  { %146 = vmatpush.msra.mxu3 %v123_v19  ;;  %v30_v26 = vld [vmem:[%s396_s2 + $0x60] sm:$0xff]  ;;  %127 = vmatpush.msra.mxu2 %v106_v20  ;;  %v29_v31 = vld [vmem:[%s396_s2 + $0x58] sm:$0xff]  ;;  %v103_v32 = vld [vmem:[%s397_s3 + $0x50] sm:$0xff] }
   0xc   :  { %55 = vmatpush.msra.mxu0 %v38_v10  ;;  %75 = vmatpush.msra.mxu1 %v39_v11  ;;  %v119_v33 = vld [vmem:[%s397_s3 + $0xd0] sm:$0xff]  ;;  %v26_v34 = vld [vmem:[%s396_s2 + $0x40] sm:$0xff]  ;;  %v27_v35 = vld [vmem:[%s396_s2 + $0x48] sm:$0xff] }
   0xd   :  { %147 = vmatpush.msra.mxu3 %v122_v21  ;;  %128 = vmatpush.msra.mxu2 %v105_v24  ;;  %v102_v36 = vld [vmem:[%s397_s3 + $0x48] sm:$0xff]  ;;  %v24_v38 = vld [vmem:[%s396_s2 + $0x30] sm:$0xff]  ;;  %v25_v39 = vld [vmem:[%s396_s2 + $0x38] sm:$0xff] }
   0xe   :  { %56 = vmatpush.msra.mxu0 %v36_v12  ;;  %76 = vmatpush.msra.mxu1 %v37_v13  ;;  %v118_v37 = vld [vmem:[%s397_s3 + $0xc8] sm:$0xff]  ;;  %v101_v40 = vld [vmem:[%s397_s3 + $0x40] sm:$0xff]  ;;  %v100_v44 = vld [vmem:[%s397_s3 + $0x38] sm:$0xff] }
   0xf   :  { %148 = vmatpush.msra.mxu3 %v121_v25  ;;  %129 = vmatpush.msra.mxu2 %v104_v28  ;;  %v117_v41 = vld [vmem:[%s397_s3 + $0xc0] sm:$0xff]  ;;  %v23_v43 = vld [vmem:[%s396_s2 + $0x28] sm:$0xff]  ;;  %v116_v45 = vld [vmem:[%s397_s3 + $0xb8] sm:$0xff] }
  0x10   :  { %57 = vmatpush.msra.mxu0 %v34_v17  ;;  %77 = vmatpush.msra.mxu1 %v35_v18  ;;  %v22_v42 = vld [vmem:[%s396_s2 + $0x20] sm:$0xff]  ;;  %v20_v46 = vld [vmem:[%s396_s2 + $0x10] sm:$0xff]  ;;  %v21_v47 = vld [vmem:[%s396_s2 + $0x18] sm:$0xff] }
  0x11   :  { %149 = vmatpush.msra.mxu3 %v120_v29  ;;  %130 = vmatpush.msra.mxu2 %v103_v32  ;;  %v99_v48 = vld [vmem:[%s397_s3 + $0x30] sm:$0xff]  ;;  %v18_v50 = vld [vmem:[%s396_s2] sm:$0xff]  ;;  %v19_v51 = vld [vmem:[%s396_s2 + $0x8] sm:$0xff] }
  0x12   :  { %58 = vmatpush.msra.mxu0 %v32_v22  ;;  %78 = vmatpush.msra.mxu1 %v33_v23  ;;  %v115_v49 = vld [vmem:[%s397_s3 + $0xb0] sm:$0xff]  ;;  %v17_v52 = vld [vmem:[%s398_s0] sm:$0xff]  ;;  %v98_v53 = vld [vmem:[%s397_s3 + $0x28] sm:$0xff] }
  0x13   :  { %150 = vmatpush.msra.mxu3 %v119_v33  ;;  %131 = vmatpush.msra.mxu2 %v102_v36  ;;  %v114_v54 = vld [vmem:[%s397_s3 + $0xa8] sm:$0xff]  ;;  %v97_v55 = vld [vmem:[%s397_s3 + $0x20] sm:$0xff]  ;;  %v96_v57 = vld [vmem:[%s397_s3 + $0x18] sm:$0xff] }
  0x14   :  { %59 = vmatpush.msra.mxu0 %v30_v26  ;;  %79 = vmatpush.msra.mxu1 %v31_v27  ;;  %v113_v56 = vld [vmem:[%s397_s3 + $0xa0] sm:$0xff]  ;;  %v112_v58 = vld [vmem:[%s397_s3 + $0x98] sm:$0xff]  ;;  %v95_v59 = vld [vmem:[%s397_s3 + $0x10] sm:$0xff] }
  0x15   :  { %151 = vmatpush.msra.mxu3 %v118_v37  ;;  %132 = vmatpush.msra.mxu2 %v101_v40  ;;  %v111_v60 = vld [vmem:[%s397_s3 + $0x90] sm:$0xff]  ;;  %v94_v61 = vld [vmem:[%s397_s3 + $0x8] sm:$0xff]  ;;  %v93_v63 = vld [vmem:[%s397_s3] sm:$0xff] }
  0x16   :  { %60 = vmatpush.msra.mxu0 %v28_v30  ;;  %80 = vmatpush.msra.mxu1 %v29_v31  ;;  %v110_v62 = vld [vmem:[%s397_s3 + $0x88] sm:$0xff]  ;;  %v109_v0 = vld [vmem:[%s397_s3 + $0x80] sm:$0xff] }
  0x17   :  { %152 = vmatpush.msra.mxu3 %v117_v41  ;;  %133 = vmatpush.msra.mxu2 %v100_v44  ;;  %v90_v1 = vld [vmem:[%s399_s1] sm:$0xff] }
  0x18   :  { %61 = vmatpush.msra.mxu0 %v26_v34  ;;  %81 = vmatpush.msra.mxu1 %v27_v35 }
  0x19   :  { %153 = vmatpush.msra.mxu3 %v116_v45  ;;  %134 = vmatpush.msra.mxu2 %v99_v48 }
  0x1a   :  { %62 = vmatpush.msra.mxu0 %v24_v38  ;;  %82 = vmatpush.msra.mxu1 %v25_v39 }
  0x1b   :  { %154 = vmatpush.msra.mxu3 %v115_v49  ;;  %135 = vmatpush.msra.mxu2 %v98_v53 }
  0x1c   :  { %63 = vmatpush.msra.mxu0 %v22_v42  ;;  %83 = vmatpush.msra.mxu1 %v23_v43 }
  0x1d   :  { %155 = vmatpush.msra.mxu3 %v114_v54  ;;  %136 = vmatpush.msra.mxu2 %v97_v55 }
  0x1e   :  { %64 = vmatpush.msra.mxu0 %v20_v46  ;;  %84 = vmatpush.msra.mxu1 %v21_v47 }
  0x1f   :  { %156 = vmatpush.msra.mxu3 %v113_v56  ;;  %137 = vmatpush.msra.mxu2 %v96_v57 }
  0x20   :  { %65 = vmatpush.msra.mxu0 %v18_v50  ;;  %85 = vmatpush.msra.mxu1 %v19_v51 }
  0x21   :  { %66 = vmatmul.f32.vlgmr.msra.gmra.mxu0 %v17_v52  ;;  %86 = vmatmul.f32.vlgmr.msra.gmra.mxu1 %v17_v52 }
  0x22   :  { %157 = vmatpush.msra.mxu3 %v112_v58  ;;  %138 = vmatpush.msra.mxu2 %v95_v59 }
  0x24   :  { %158 = vmatpush.msra.mxu3 %v111_v60  ;;  %139 = vmatpush.msra.mxu2 %v94_v61 }
  0x26   :  { %159 = vmatpush.msra.mxu3 %v110_v62  ;;  %140 = vmatpush.msra.mxu2 %v93_v63 }
  0x28   :  { %160 = vmatpush.msra.mxu3 %v109_v0 }
  0x9e   :  { %v67_v2 = vpop.f32.mrf.mxu0  ;;  %v87_v3 = vpop.f32.mrf.mxu1 }
  0x9f   :  { %v91_v4 = vmul.f32 %v90_v1, %v67_v2  ;;  %v92_v5 = vmul.f32 %v90_v1, %v87_v3 }
  0xa1   :  { %141 = vmatmul.f32.vlgmr.msra.gmra.mxu2 %v91_v4  ;;  %161 = vmatmul.f32.vlgmr.msra.gmra.mxu3 %v92_v5 }
 0x124   :  { %v142_v6 = vpop.f32.mrf.mxu2  ;;  %v162_v7 = vpop.f32.mrf.mxu3 }
 0x125   :  { %v163_v8 = vadd.f32 %v162_v7, %v142_v6 }
 0x127   :  { %165 = vst [vmem:[%s400_s4] sm:$0xff] %v163_v8 }

</bundles_post_ra>
